<compile_context>
chip_gen: v5e
topology: v5e:2x2
jax: 0.10.0
libtpu: 0.0.40
codegen_flags: <defaults>
</compile_context>

<pallas_src>
import math
import functools

import jax
import jax.numpy as jnp
from jax import lax
from jax.experimental import pallas as pl
from jax.experimental.pallas import tpu as pltpu


# ----------------------------------------------------------------------------
# Tiling heuristics / compiler-limit helpers
# ----------------------------------------------------------------------------
def _pick_row_tile(S, target=256):
    """Largest multiple-of-8 divisor of S that is <= target (else S itself)."""
    if S <= target:
        return S
    best = None
    t = 8
    while t <= target:
        if S % t == 0:
            best = t
        t += 8
    return best if best is not None else S


def _pick_head_group(H, Dh, target=256):
    """Largest divisor G of H such that G * Dh <= max(target, Dh)."""
    best = 1
    for g in range(1, H + 1):
        if H % g == 0 and g * Dh <= max(target, Dh):
            best = g
    return best


def _vmem_limit_bytes():
    """~85% of physical VMEM, capped at 100 MiB (fits 64 MiB v7x with headroom)."""
    cap = 128 * 1024 * 1024
    try:
        info = pltpu.get_tpu_info()
        cap = int(getattr(info, "vmem_capacity_bytes", cap) or cap)
    except Exception:
        pass
    return int(max(32 * 1024 * 1024, min(int(cap * 0.85), 100 * 1024 * 1024)))


# ----------------------------------------------------------------------------
# Kernel 1: time_mixer  (xt = [x, temporal_emb] @ Wm^T + bm)
# ----------------------------------------------------------------------------
def _time_mixer_kernel(x_ref, temp_ref, wmx_ref, wmt_ref, bm_ref, out_ref):
    xt = (jnp.dot(x_ref[0], wmx_ref[...], preferred_element_type=jnp.float32)
          + jnp.dot(temp_ref[...], wmt_ref[...], preferred_element_type=jnp.float32)
          + bm_ref[...])
    out_ref[0] = xt.astype(out_ref.dtype)


# ----------------------------------------------------------------------------
# Kernel 2: per-(query-tile, head-group) attention + fused o_proj reduction
# ----------------------------------------------------------------------------
def _temporal_attn_kernel(xt_ref, wq_ref, wk_ref, wv_ref,
                          bq_ref, bk_ref, bv_ref, wo_ref, bo_ref,
                          out_ref, *, scale, G, TQ, approx_recip):
    qi = pl.program_id(1)          # query-row tile index
    hg = pl.program_id(2)          # head-group index (reduction axis, innermost)
    cdt = xt_ref.dtype             # compute dtype (f32 or bf16)
    S = xt_ref.shape[1]
    E_out = out_ref.shape[2]

    # Initialize the (TQ, E) output block with the o_proj bias once per (b, qi);
    # every head-group step then accumulates directly into it (no f32 scratch).
    @pl.when(hg == 0)
    def _init():
        out_ref[0] = jnp.broadcast_to(bo_ref[...], (TQ, E_out)).astype(out_ref.dtype)

    xt = xt_ref[0]                                              # (S, E)  K/V source
    if TQ == S:
        xq = xt                                                 # no query tiling
    else:
        xq = xt_ref[0, pl.ds(pl.multiple_of(qi * TQ, TQ), TQ), :]   # (TQ, E)

    acc = jnp.zeros((TQ, E_out), jnp.float32)
    for g in range(G):             # static loop over the heads of this group
        wq = wq_ref[0, g]          # (E, Dh) whole blocks -> no lane-unaligned slices
        wk = wk_ref[0, g]
        wv = wv_ref[0, g]

        q = (jnp.dot(xq, wq, preferred_element_type=jnp.float32)
             + bq_ref[0, g]).astype(cdt)                        # (TQ, Dh)
        k = (jnp.dot(xt, wk, preferred_element_type=jnp.float32)
             + bk_ref[0, g]).astype(cdt)                        # (S, Dh)
        v = (jnp.dot(xt, wv, preferred_element_type=jnp.float32)
             + bv_ref[0, g]).astype(cdt)                        # (S, Dh)

        # scaled dot-product attention; contract last dims (no explicit k.T)
        s = lax.dot_general(q, k, (((1,), (1,)), ((), ())),
                            preferred_element_type=jnp.float32) * scale   # (TQ, S)
        m = jnp.max(s, axis=-1, keepdims=True)
        p = jnp.exp(s - m)
        denom = jnp.sum(p, axis=-1, keepdims=True)
        if approx_recip:
            p = p * pl.reciprocal(denom, approx=True)           # EUP slot (bf16 path)
        else:
            p = p / denom                                       # exact (f32 path)

        o_g = jnp.dot(p.astype(cdt), v, preferred_element_type=jnp.float32)  # (TQ, Dh)
        # fused o_proj: this head's slice of Wo^T
        acc = acc + jnp.dot(o_g.astype(cdt), wo_ref[0, g],
                            preferred_element_type=jnp.float32)             # (TQ, E)

    out_ref[0] += acc.astype(out_ref.dtype)


# ----------------------------------------------------------------------------
# Wrapper
# ----------------------------------------------------------------------------
def temporal_attention_forward(x, params, num_heads, temporal_positions=None,
                               compute_dtype=jnp.float32,
                               q_tile=None, group_size=None):
    B, S, E = x.shape
    H = num_heads
    Dh = E // H
    assert Dh * H == E, "embed_dim must be divisible by num_heads"

    cdt = compute_dtype
    f32 = jnp.float32
    itemsize = jnp.dtype(cdt).itemsize
    vmem_limit = _vmem_limit_bytes()

    if temporal_positions is None:
        temporal_positions = jnp.arange(S)
    # Temporal-embedding row gather (tiny, data-dependent) stays as XLA glue.
    # TODO(synk): move it in-kernel via scalar prefetch + pl.Element row maps.
    temp_emb = params["temporal_embeddings"][0, temporal_positions]      # (S, E)

    # ---- tiling choices ------------------------------------------------------
    TQ = q_tile if q_tile is not None else _pick_row_tile(S, target=256)
    assert S % TQ == 0 and (TQ == S or TQ % 8 == 0), "bad q_tile"
    QT = S // TQ
    G = group_size if group_size is not None else _pick_head_group(H, Dh)
    assert H % G == 0, "bad group_size"
    HG = H // G

    # ---- weight repacking (glue; tiny, once per call) ------------------------
    wm = params["wm"]                                    # (E, 2E)  Linear(2E -> E)
    wmx_t = wm[:, :E].T.astype(cdt)                      # (E, E)
    wmt_t = wm[:, E:].T.astype(cdt)                      # (E, E)
    bm = params["bm"].reshape(1, E).astype(f32)

    def per_head(w):                                     # w: (E_out, E_in)
        return w.T.reshape(E, H, Dh).transpose(1, 0, 2)  # (H, E, Dh)

    wq_g = per_head(params["wq"]).reshape(HG, G, E, Dh).astype(cdt)
    wk_g = per_head(params["wk"]).reshape(HG, G, E, Dh).astype(cdt)
    wv_g = per_head(params["wv"]).reshape(HG, G, E, Dh).astype(cdt)
    bq_g = params["bq"].reshape(HG, G, 1, Dh).astype(f32)
    bk_g = params["bk"].reshape(HG, G, 1, Dh).astype(f32)
    bv_g = params["bv"].reshape(HG, G, 1, Dh).astype(f32)
    wo_g = params["wo"].T.reshape(H, Dh, E).reshape(HG, G, Dh, E).astype(cdt)
    bo2 = params["bo"].reshape(1, E).astype(f32)

    x_c = x.astype(cdt)
    t_c = temp_emb.astype(cdt)

    # ---- stage 1: time_mixer -------------------------------------------------
    TS = _pick_row_tile(S, target=512)
    ST = S // TS
    mixer_cost = pl.CostEstimate(
        flops=int(4 * B * S * E * E),
        transcendentals=0,
        bytes_accessed=int(2 * B * S * E * itemsize + 2 * E * E * itemsize))
    xt = pl.pallas_call(
        _time_mixer_kernel,
        out_shape=jax.ShapeDtypeStruct((B, S, E), cdt),
        grid_spec=pltpu.PrefetchScalarGridSpec(
            num_scalar_prefetch=0,
            grid=(B, ST),
            in_specs=[
                pl.BlockSpec((1, TS, E), lambda b, si: (b, si, 0)),   # x rows
                pl.BlockSpec((TS, E), lambda b, si: (si, 0)),         # temporal emb rows
                pl.BlockSpec((E, E), lambda b, si: (0, 0)),           # Wm[:, :E]^T
                pl.BlockSpec((E, E), lambda b, si: (0, 0)),           # Wm[:, E:]^T
                pl.BlockSpec((1, E), lambda b, si: (0, 0)),           # bm
            ],
            out_specs=pl.BlockSpec((1, TS, E), lambda b, si: (b, si, 0)),
        ),
        compiler_params=pltpu.CompilerParams(
            dimension_semantics=("parallel", "parallel"),
            vmem_limit_bytes=vmem_limit),
        cost_estimate=mixer_cost,
    )(x_c, t_c, wmx_t, wmt_t, bm)

    # ---- stage 2: attention + fused o_proj ------------------------------------
    scale = 1.0 / math.sqrt(Dh)
    kernel = functools.partial(
        _temporal_attn_kernel, scale=scale, G=G, TQ=TQ,
        approx_recip=(jnp.dtype(cdt) == jnp.dtype(jnp.bfloat16)))
    attn_cost = pl.CostEstimate(
        flops=int(2 * B * H * ((2 + 2 * QT) * S * E * Dh + 2 * S * S * Dh)),
        transcendentals=int(B * H * S * S),
        bytes_accessed=int(B * S * E * itemsize + 4 * E * E * itemsize
                           + B * S * E * 4))

    def run_attention(single_buffer_resident):
        def bspec(shape, imap, resident=False):
            # Blocks whose index is constant across the inner grid axes gain
            # nothing from double-buffering -> single-buffer them to halve VMEM.
            if resident and single_buffer_resident:
                return pl.BlockSpec(shape, imap, pipeline_mode=pl.Buffered(1))
            return pl.BlockSpec(shape, imap)

        return pl.pallas_call(
            kernel,
            out_shape=jax.ShapeDtypeStruct((B, S, E), jnp.float32),
            grid_spec=pltpu.PrefetchScalarGridSpec(
                num_scalar_prefetch=0,
                grid=(B, QT, HG),                 # head-group axis = reduction (last)
                in_specs=[
                    bspec((1, S, E), lambda b, qi, hg: (b, 0, 0), resident=True),   # xt
                    bspec((1, G, E, Dh), lambda b, qi, hg: (hg, 0, 0, 0)),          # Wq
                    bspec((1, G, E, Dh), lambda b, qi, hg: (hg, 0, 0, 0)),          # Wk
                    bspec((1, G, E, Dh), lambda b, qi, hg: (hg, 0, 0, 0)),          # Wv
                    bspec((1, G, 1, Dh), lambda b, qi, hg: (hg, 0, 0, 0)),          # bq
                    bspec((1, G, 1, Dh), lambda b, qi, hg: (hg, 0, 0, 0)),          # bk
                    bspec((1, G, 1, Dh), lambda b, qi, hg: (hg, 0, 0, 0)),          # bv
                    bspec((1, G, Dh, E), lambda b, qi, hg: (hg, 0, 0, 0)),          # Wo^T
                    bspec((1, E), lambda b, qi, hg: (0, 0), resident=True),         # bo
                ],
                out_specs=pl.BlockSpec((1, TQ, E), lambda b, qi, hg: (b, qi, 0)),
            ),
            compiler_params=pltpu.CompilerParams(
                dimension_semantics=("parallel", "parallel", "arbitrary"),
                vmem_limit_bytes=vmem_limit),
            cost_estimate=attn_cost,
        )(xt, wq_g, wk_g, wv_g, bq_g, bk_g, bv_g, wo_g, bo2)

    try:
        return run_attention(True)
    except Exception:
        # pl.Buffered(1) single-buffering not supported by this jax/libtpu combo;
        # fall back to default double-buffered specs.
        return run_attention(False)


# ----------------------------------------------------------------------------
# Deterministic parameter construction (synthetic Xavier-like init)
# ----------------------------------------------------------------------------
def make_params(key, embed_dim, max_temporal_length):
    E = embed_dim
    ks = jax.random.split(key, 7)

    def xavier(k, shape, fan_in, fan_out):
        gain = 1.0 / math.sqrt(fan_in + fan_out)
        return jax.random.uniform(k, shape, jnp.float32, -1.0, 1.0) * gain

    return {
        "wq": xavier(ks[0], (E, E), E, E), "bq": jnp.zeros((E,), jnp.float32),
        "wk": xavier(ks[1], (E, E), E, E), "bk": jnp.zeros((E,), jnp.float32),
        "wv": xavier(ks[2], (E, E), E, E), "bv": jnp.zeros((E,), jnp.float32),
        "wo": xavier(ks[3], (E, E), E, E), "bo": jnp.zeros((E,), jnp.float32),
        # time_mixer: Linear(2E -> E) : weight (E, 2E)
        "wm": xavier(ks[4], (E, 2 * E), 2 * E, E),
        "bm": jnp.zeros((E,), jnp.float32),
        "temporal_embeddings": xavier(ks[5], (1, max_temporal_length, E),
                                      max_temporal_length, E),
    }


# ----------------------------------------------------------------------------
# Pure-JAX reference (self-check of the Pallas kernels)
# ----------------------------------------------------------------------------
def reference_forward(x, params, num_heads):
    B, S, E = x.shape
    H, Dh = num_heads, E // num_heads
    temp = jnp.broadcast_to(params["temporal_embeddings"][:, :S], (B, S, E))
    cat = jnp.concatenate([x, temp], axis=-1)
    xt = cat @ params["wm"].T + params["bm"]
    q = (xt @ params["wq"].T + params["bq"]).reshape(B, S, H, Dh).transpose(0, 2, 1, 3)
    k = (xt @ params["wk"].T + params["bk"]).reshape(B, S, H, Dh).transpose(0, 2, 1, 3)
    v = (xt @ params["wv"].T + params["bv"]).reshape(B, S, H, Dh).transpose(0, 2, 1, 3)
    s = jnp.einsum("bhqd,bhkd->bhqk", q, k) / math.sqrt(Dh)
    p = jax.nn.softmax(s, axis=-1)
    o = jnp.einsum("bhqk,bhkd->bhqd", p, v).transpose(0, 2, 1, 3).reshape(B, S, E)
    return o @ params["wo"].T + params["bo"]


if __name__ == "__main__":
    key = jax.random.PRNGKey(0)
    k1, k2, k3 = jax.random.split(key, 3)

    # --- case 1: tiny smoke test (QT = 1, HG = 1) -----------------------------
    B, S, E, H, MAX_T = 2, 8, 32, 4, 16
    kx, kp = jax.random.split(k1)
    x = jax.random.normal(kx, (B, S, E), jnp.float32)
    params = make_params(kp, E, MAX_T)
    ref = reference_forward(x, params, num_heads=H)

    out = jax.block_until_ready(temporal_attention_forward(x, params, num_heads=H))
    assert out.shape == (B, S, E)
    assert jnp.allclose(out, ref, atol=2e-3, rtol=2e-3), "f32 mismatch (case 1)"

    out_bf16 = jax.block_until_ready(
        temporal_attention_forward(x, params, num_heads=H,
                                   compute_dtype=jnp.bfloat16))
    assert jnp.allclose(out_bf16, ref, atol=5e-2, rtol=5e-2), "bf16 mismatch (case 1)"

    # --- case 2: exercises query tiling (QT=2), head-group reduction (HG=2),
    #             and real (8,128)-aligned tiles ------------------------------
    B2, S2, E2, H2, MAX_T2 = 1, 256, 128, 4, 256
    kx2, kp2 = jax.random.split(k2)
    x2 = jax.random.normal(kx2, (B2, S2, E2), jnp.float32)
    params2 = make_params(kp2, E2, MAX_T2)
    ref2 = reference_forward(x2, params2, num_heads=H2)
    out2 = jax.block_until_ready(
        temporal_attention_forward(x2, params2, num_heads=H2,
                                   q_tile=128, group_size=2))
    assert jnp.allclose(out2, ref2, atol=2e-3, rtol=2e-3), "f32 mismatch (case 2)"

    print("KERNEL_OK")
</pallas_src>

<mosaic_0001>
module attributes {stable_mosaic.version = 11 : i64} {
  func.func @_time_mixer_kernel(%arg0: i32, %arg1: i32, %arg2: memref<1x8x32xf32, #tpu.memory_space<vmem>>, %arg3: memref<8x32xf32, #tpu.memory_space<vmem>>, %arg4: memref<32x32xf32, #tpu.memory_space<vmem>>, %arg5: memref<32x32xf32, #tpu.memory_space<vmem>>, %arg6: memref<1x32xf32, #tpu.memory_space<vmem>>, %arg7: memref<1x8x32xf32, #tpu.memory_space<vmem>>) attributes {dimension_semantics = [#tpu.dimension_semantics<parallel>, #tpu.dimension_semantics<parallel>], iteration_bounds = array<i64: 2, 1>, scalar_prefetch = 0 : i64, scratch_operands = 0 : i64, tpu.core_type = #tpu.core_type<tc>, window_params = [{transform_indices = @transform_0, window_bounds = array<i64: 1, 8, 32>}, {transform_indices = @transform_1, window_bounds = array<i64: 8, 32>}, {pipeline_mode = #tpu.pipeline_mode<synchronous>, transform_indices = @transform_2, window_bounds = array<i64: 32, 32>}, {pipeline_mode = #tpu.pipeline_mode<synchronous>, transform_indices = @transform_3, window_bounds = array<i64: 32, 32>}, {pipeline_mode = #tpu.pipeline_mode<synchronous>, transform_indices = @transform_4, window_bounds = array<i64: 1, 32>}, {transform_indices = @transform_5, window_bounds = array<i64: 1, 8, 32>}]} {
    %c0 = arith.constant 0 : index
    %c0_0 = arith.constant 0 : index
    %c0_1 = arith.constant 0 : index
    %0 = vector.load %arg2[%c0, %c0_0, %c0_1] : memref<1x8x32xf32, #tpu.memory_space<vmem>>, vector<1x8x32xf32>
    %1 = vector.shape_cast %0 : vector<1x8x32xf32> to vector<8x32xf32>
    %c0_2 = arith.constant 0 : index
    %c0_3 = arith.constant 0 : index
    %2 = vector.load %arg4[%c0_2, %c0_3] : memref<32x32xf32, #tpu.memory_space<vmem>>, vector<32x32xf32>
    %cst = arith.constant dense<0.000000e+00> : vector<8x32xf32>
    %3 = tpu.matmul %1, %2, %cst {dimension_numbers = #tpu.dot_dimension_numbers<[1], [0], [0], [1], [0, 0, 1, 1], [], []>} : vector<8x32xf32>, vector<32x32xf32>, vector<8x32xf32> -> vector<8x32xf32>
    %c0_4 = arith.constant 0 : index
    %c0_5 = arith.constant 0 : index
    %4 = vector.load %arg3[%c0_4, %c0_5] : memref<8x32xf32, #tpu.memory_space<vmem>>, vector<8x32xf32>
    %c0_6 = arith.constant 0 : index
    %c0_7 = arith.constant 0 : index
    %5 = vector.load %arg5[%c0_6, %c0_7] : memref<32x32xf32, #tpu.memory_space<vmem>>, vector<32x32xf32>
    %cst_8 = arith.constant dense<0.000000e+00> : vector<8x32xf32>
    %6 = tpu.matmul %4, %5, %cst_8 {dimension_numbers = #tpu.dot_dimension_numbers<[1], [0], [0], [1], [0, 0, 1, 1], [], []>} : vector<8x32xf32>, vector<32x32xf32>, vector<8x32xf32> -> vector<8x32xf32>
    %7 = arith.addf %3, %6 : vector<8x32xf32>
    %c0_9 = arith.constant 0 : index
    %c0_10 = arith.constant 0 : index
    %8 = vector.load %arg6[%c0_9, %c0_10] : memref<1x32xf32, #tpu.memory_space<vmem>>, vector<1x32xf32>
    %9 = vector.broadcast %8 : vector<1x32xf32> to vector<8x32xf32>
    %10 = arith.addf %7, %9 : vector<8x32xf32>
    %c0_11 = arith.constant 0 : index
    %c0_12 = arith.constant 0 : index
    %c0_13 = arith.constant 0 : index
    %11 = vector.load %arg7[%c0_11, %c0_12, %c0_13] : memref<1x8x32xf32, #tpu.memory_space<vmem>>, vector<1x8x32xf32>
    %12 = vector.shape_cast %11 : vector<1x8x32xf32> to vector<8x32xf32>
    %13 = vector.shape_cast %10 : vector<8x32xf32> to vector<1x8x32xf32>
    tpu.vector_store %arg7[%c0_11, %c0_12, %c0_13], %13 {strides = array<i32>} : memref<1x8x32xf32, #tpu.memory_space<vmem>>, vector<1x8x32xf32>,
    return
  }
  func.func @transform_0(%arg0: i32, %arg1: i32) -> (i32, i32, i32) {
    %c0_i32 = arith.constant 0 : i32
    %c0_i32_0 = arith.constant 0 : i32
    return %arg0, %arg1, %c0_i32 : i32, i32, i32
  }
  func.func @transform_1(%arg0: i32, %arg1: i32) -> (i32, i32) {
    %c0_i32 = arith.constant 0 : i32
    %c0_i32_0 = arith.constant 0 : i32
    return %arg1, %c0_i32 : i32, i32
  }
  func.func @transform_2(%arg0: i32, %arg1: i32) -> (i32, i32) {
    %c0_i32 = arith.constant 0 : i32
    %c0_i32_0 = arith.constant 0 : i32
    %c0_i32_1 = arith.constant 0 : i32
    return %c0_i32, %c0_i32_0 : i32, i32
  }
  func.func @transform_3(%arg0: i32, %arg1: i32) -> (i32, i32) {
    %c0_i32 = arith.constant 0 : i32
    %c0_i32_0 = arith.constant 0 : i32
    %c0_i32_1 = arith.constant 0 : i32
    return %c0_i32, %c0_i32_0 : i32, i32
  }
  func.func @transform_4(%arg0: i32, %arg1: i32) -> (i32, i32) {
    %c0_i32 = arith.constant 0 : i32
    %c0_i32_0 = arith.constant 0 : i32
    %c0_i32_1 = arith.constant 0 : i32
    return %c0_i32, %c0_i32_0 : i32, i32
  }
  func.func @transform_5(%arg0: i32, %arg1: i32) -> (i32, i32, i32) {
    %c0_i32 = arith.constant 0 : i32
    %c0_i32_0 = arith.constant 0 : i32
    return %arg0, %arg1, %c0_i32 : i32, i32, i32
  }
}

</mosaic_0001>

<bundles_post_ra>
// kernel: tpu_custom_call.1
= control target key start
LH: loop header
LB: loop body
LE: loop exit
PB: predicated region body
PF: predicated region fallthrough
CT: control target
= control target key end

     0   :  { %s1050_s0 = inlined_call_operand.hbm [shape: f32[2,8,32], index: 0, kind: input, shape index: {}]   ;;  %s1051_s1 = inlined_call_operand.hbm [shape: f32[8,32], index: 1, kind: input, shape index: {}]   ;;  %s1052_s2 = inlined_call_operand.hbm [shape: f32[32,32], index: 2, kind: input, shape index: {}]   ;;  %s1053_s3 = inlined_call_operand.hbm [shape: f32[32,32], index: 3, kind: input, shape index: {}]   ;;  %s1054_s4 = inlined_call_operand.vmem [shape: f32[1,32], index: 4, kind: input, shape index: {}]   ;;  %s1055_s5 = inlined_call_operand.hbm [shape: f32[2,8,32], index: 5, kind: output, shape index: {}]  }
   0x1   :  { %1056 = sst [smem:[#allocation15_spill]] %s1051_s1 }
   0x2   :  { %10 = vsyncpa [#allocation3], 0 }
   0x3   :  { %12 = vsyncpa [#allocation3 + $0x1], 0 }
   0x4   :  { %13 = vsyncpa [#allocation6], 0 }
   0x5   :  { %14 = vsyncpa [#allocation9], 0 }
   0x6   :  { %15 = vsyncpa [#allocation4], 0 }
   0x7   :  { %17 = vsyncpa [#allocation4 + $0x1], 0  ;;  %s869_s18 = smov 0   ;;  %s871_s19 = smov 0  }
   0x8   :  { %s873_s20 = smov 0   ;;  %s875_s21 = smov 0  }
   0x9   :  { %s877_s22 = smov 0   ;;  %s879_s23 = smov 0  }
   0xa LB: > { %s505_s24 = sadd.s32 4294967295, %s832_s23   ;;  %s506_s25 = sadd.s32 4294967294, %s832_s23   ;;  %s832_s23 = sphi %s879_s23, %s23_s23   ;;  %s828_s22 = sphi %s877_s22, %s1070_s22   ;;  %s824_s21 = sphi %s875_s21, %s1069_s21   ;;  %s820_s20 = sphi %s873_s20, %s1068_s20   ;;  %s816_s19 = sphi %s871_s19, %s1067_s19   ;;  %s812_s18 = sphi %s869_s18, %s1066_s18  }
   0xb   : > { %p57_p0 = scmp.ne.s32.totalorder %s816_s19, %s812_s18  ;;  %p903_p1 = scmp.eq.s32.totalorder %s505_s24, 0 }
   0xc   : > { %p907_p2 = scmp.eq.s32.totalorder %s505_s24, 1  ;;  %p178_p3 = scmp.eq.s32.totalorder %s506_s25, 1 }
   0xd   : > { %p913_p4 = por %p903_p1, %p57_p0  ;;  %p507_p5 = scmp.ge.s32.totalorder %s832_s23, 1 }
   0xe   : > { %p918_p6 = por %p178_p3, %p57_p0  ;;  %p185_p7 = scmp.lt.s32.totalorder %s832_s23, 3 }
   0xf   : > { %s1061_s1 = sld [smem:[#allocation15_spill]]  ;;  %p511_p9 = scmp.ge.s32.totalorder %s832_s23, 2 }
  0x10   : > { %p926_p8 = pnand %p507_p5, %p185_p7  ;;  %s834_s9 = smov [#allocation5]  }
  0x11   : > { %s201_s10 = sshll.u32 %s834_s9, 4  ;;  %s210_s13 = sshll.u32 %s1052_s2, 4  ;;  %s202_s10 = int_to_ptr.vmem [resolvable:$true] %s201_s10  ;;  %s211_s13 = int_to_ptr.hbm [resolvable:$true] %s210_s13 }
  0x12   : > { %p542_p10 = pneg %p926_p8  ;;  %s835_s15 = smov [#allocation7]  }
  0x13   : > { %s212_s16 = sshll.u32 %s835_s15, 4  ;;  %s836_s17 = smov 128   ;;  %s213_s16 = int_to_ptr.vmem [resolvable:$true] %s212_s16 }
  0x14   : > { %p938_p11 = pnand %p542_p10, %p903_p1  ;;  %s837_s24 = smov 8  }
  0x15   : > { %s199_s7 = sshll.u32 %s1061_s1, 4  ;;  %s224_s6 = sshll.u32 %s1053_s3, 4  ;;  %s200_s7 = int_to_ptr.hbm [resolvable:$true] %s199_s7  ;;  %s225_s6 = int_to_ptr.hbm [resolvable:$true] %s224_s6 }
  0x16   : > { %545 = dma.hbm_to_vmem [thread:$0]  (!%p938_p11), %s200_s7, 128, %s202_s10, [#allocation6]  }
  0x17   : > { %548 = dma.hbm_to_vmem [thread:$0]  (!%p938_p11), %s211_s13, 512, %s213_s16, [#allocation6], %s836_s17, %s836_s17, %s837_s24  }
  0x18   : > { %s838_s9 = smov [#allocation8]   ;;  %s44_s7 = sadd.s32 1, %s820_s20 }
  0x19   : > { %s226_s11 = sshll.u32 %s838_s9, 4  ;;  %s35_s10 = sadd.s32 1, %s828_s22  ;;  %s227_s11 = int_to_ptr.vmem [resolvable:$true] %s226_s11 }
  0x1a   : > { %551 = dma.hbm_to_vmem [thread:$0]  (!%p938_p11), %s225_s6, 512, %s227_s11, [#allocation9], %s836_s17, %s836_s17, %s837_s24  }
  0x1b   : > { %p51_p12 = scmp.ne.s32.totalorder %s820_s20, %s816_s19  ;;  %p37_p13 = scmp.ge.s32.totalorder %s35_s10, 2 }
  0x1c   : > { %p52_p0 = scmp.eq.s32.totalorder %s832_s23, 0  ;;  %p563_p5 = scmp.lt.s32.totalorder %s832_s23, 2 }
  0x1d   : > { %p958_p3 = por %p907_p2, %p51_p12  ;;  %s1072_s10 = smov (%p37_p13, %s35_s10), 0 }
  0x1e   : > { %p965_p7 = por %p52_p0, %p51_p12  ;;  %s243_s14 = sand.u32 1, %s820_s20  }
  0x1f   : > { %s39_s15 = ssub.s32 %s828_s22, %s1072_s10  ;;  %s512_s16 = sshll.u32 %s243_s14, 3 }
  0x20   : > { %p42_p10 = scmp.eq.s32.totalorder %s39_s15, 0  ;;  %s513_s17 = sshll.u32 %s828_s22, 3 }
  0x21   : > { %s252_s30 = scalar_lea.hbm %s1050_s0, %s513_s17  ;;  %s247_s6 = scalar_lea.vmem [#allocation2], %s512_s16 }
  0x22   : > { %s974_s27 = scalar_select %p42_p10, %s820_s20, %s44_s7  }
  0x23   : > { %s256_s9 = sshll.u32 %s247_s6, 4  ;;  %s254_s11 = sshll.u32 %s252_s30, 4  ;;  %s257_s9 = int_to_ptr.vmem [resolvable:$true] %s256_s9  ;;  %s255_s11 = int_to_ptr.hbm [resolvable:$true] %s254_s11 }
  0x24   : > { %p553_p2 = pnand %p563_p5, %p965_p7  ;;  %s244_s1 = scalar_lea.sflag [#allocation3], %s243_s14 }
  0x25   : > { %265 = sbr.rel (%p926_p8) target bundleno = 189 (0xbd), region = 40  ;;  %s986_s7 = sand.u32 (!%p926_p8), 1, %s816_s19  }
  0x26   : > { %555 = dma.hbm_to_vmem [thread:$0]  (!%p553_p2), %s255_s11, 128, %s257_s9, %s244_s1  }
  0x27   : > { %s515_s15 = sshll.u32 (!%p926_p8), %s986_s7, 3  ;;  %s268_s16 = scalar_lea.sflag (!%p926_p8), [#allocation3], %s986_s7 }
  0x28   : > { %s271_s17 = scalar_lea.vmem (!%p926_p8), [#allocation2], %s515_s15 }
  0x2a   : > { %795 = dma.done.wait (%p913_p4), %s268_s16, 128  }
  0x2b   : > { %797 = vsyncadd (%p913_p4), %s268_s16, 4294967168 }
  0x2c   : > { %799 = dma.done.wait (%p903_p1), [#allocation6], 640  }
  0x2d   : > { %801 = vsyncadd (%p903_p1), [#allocation6], 4294966656 }
  0x2e   : > { %803 = dma.done.wait (%p903_p1), [#allocation9], 512  }
  0x2f   : > { %805 = vsyncadd (%p903_p1), [#allocation9], 4294966784  ;;  %v323_v0 = vld [vmem:[#allocation8 + $0x18] sm:$0xff]  ;;  %v322_v2 = vld [vmem:[#allocation8 + $0x10] sm:$0xff]  ;;  %vm324_vm0 = vcmask 261120   ;;  %s523_s1 = sshll.u32 %s824_s21, 3 }
  0x30   : > { %v318_v1 = vld [vmem:[#allocation7 + $0x18] sm:$0xff]  ;;  %340 = vmatpush.msra.mxu0 %v323_v0  ;;  %v317_v3 = vld [vmem:[#allocation7 + $0x10] sm:$0xff]  ;;  %v321_v4 = vld [vmem:[#allocation8 + $0x8] sm:$0xff]  ;;  %s389_s8 = scalar_lea.hbm %s1055_s5, %s523_s1  ;;  %s313_s24 = scalar_lea.vmem [#allocation10], %s515_s15 }
  0x31   : > { %363 = vmatpush.msra.mxu1 %v318_v1  ;;  %v316_v5 = vld [vmem:[#allocation7 + $0x8] sm:$0xff]  ;;  %v320_v6 = vld [vmem:[#allocation8] sm:$0xff]  ;;  %v319_v8 = vld [vmem:[#allocation5] sm:$0xff]  ;;  %s391_s25 = sshll.u32 %s313_s24, 4  ;;  %s393_s30 = sshll.u32 %s389_s8, 4  ;;  %s392_s25 = int_to_ptr.vmem [resolvable:$true] %s391_s25  ;;  %s394_s30 = int_to_ptr.hbm [resolvable:$true] %s393_s30 }
  0x32   : > { %341 = vmatpush.msra.mxu0 %v322_v2  ;;  %v315_v7 = vld [vmem:[#allocation7] sm:$0xff]  ;;  %v314_v9 = vld [vmem:[%s271_s17] sm:$0xff]  ;;  %s378_s21 = scalar_lea.sflag [#allocation4], %s986_s7  ;;  %s756_s6 = sshra.s32 %s394_s30, 4  ;;  %s757_s6 = int_to_ptr.hbm [resolvable:$true] %s756_s6 }
  0x33   : > { %364 = vmatpush.msra.mxu1 %v317_v3  ;;  %v621_v10 = vld [vmem:[%s1054_s4] ss:$0 sm:$0xff]  ;;  %s758_s9 = scalar_lea.hbm %s757_s6, 8  ;;  %s762_s15 = scalar_lea.hbm %s1055_s5, 16 }
  0x34   : > { %342 = vmatpush.msra.mxu0 %v321_v4  ;;  %p759_p1 = scmp.ne.s32.totalorder %s757_s6, %s758_s9  ;;  %p763_p11 = scmp.lt.s32.totalorder %s757_s6, %s1055_s5 }
  0x35   : > { %365 = vmatpush.msra.mxu1 %v316_v5  ;;  %p764_p12 = scmp.lt.s32.totalorder %s762_s15, %s758_s9 }
  0x36   : > { %343 = vmatpush.msra.mxu0 %v320_v6  ;;  %p760_p4 = pnand %p759_p1, %p958_p3 }
  0x37   : > { %366 = vmatpush.msra.mxu1 %v315_v7  ;;  %520 = vmatmul.msk.f32.vlgmr.msra.gmra.mxu0 %vm324_vm0, %v319_v8  ;;  %p765_p13 = por %p764_p12, %p763_p11 }
  0x38   : > { %521 = vmatmul.msk.f32.vlgmr.msra.gmra.mxu1 %vm324_vm0, %v314_v9  ;;  %p761_p8 = pneg %p760_p4 }
  0x3a   : > { %p766_p0 = pnand %p765_p13, %p761_p8 }
  0xb4   : > { %v345_v11 = vpop.f32.mrf.mxu0 }
  0xb5   : > { %v368_v12 = vpop.f32.mrf.mxu1 }
  0xb6   : > { %v369_v13 = vadd.f32 %v368_v12, %v345_v11 }
  0xb8   : > { %v375_v14 = vadd.f32 %v621_v10, %v369_v13 }
  0xba   : > { %376 = vst.msk [vmem:[%s313_s24] sm:$0xff] %vm324_vm0, %v375_v14 }
  0xbb   : > { %769 = shalt.err (!%p766_p0)
}
  0xbc   : > { %540 = dma.vmem_to_hbm [thread:$0]  (%p958_p3), %s392_s25, 128, %s394_s30, %s378_s21  }
  0xbd PF: > { %s405_s7 = sand.u32 1, %s812_s18   ;;  %p557_p5 = pnand %p511_p9, %p918_p6 }
  0xbe   : > { %s406_s26 = scalar_lea.sflag [#allocation4], %s405_s7 }
  0xbf   : > { %p558_p7 = pneg %p557_p5 }
  0xc1   : > { %807 = dma.done.wait (%p558_p7), %s406_s26, 128  }
  0xc2   : > { %809 = vsyncadd (%p558_p7), %s406_s26, 4294967168  ;;  %s23_s23 = sadd.s32 1, %s832_s23   ;;  %s1066_s18 = smov %s816_s19 }
  0xc3   : > { %p20_p10 = scmp.ge.s32.totalorder %s23_s23, 4   ;;  %s1067_s19 = smov %s820_s20 }
  0xc4   : > { %s1068_s20 = smov %s974_s27  ;;  %s1069_s21 = smov %s828_s22 }
  0xc5   : > { %s1070_s22 = smov %s1072_s10  ;;  %22 = sbr.rel (!%p20_p10) target bundleno = 10 (0xa), region = 98 }
  0xca   :  { %412 = vsyncpa [#allocation3], 1 }
  0xcb   :  { %414 = vsyncpa [#allocation3 + $0x1], 1 }
  0xcc   :  { %415 = vsyncpa [#allocation6], 1 }
  0xcd   :  { %416 = vsyncpa [#allocation9], 1 }
  0xce   :  { %417 = vsyncpa [#allocation4], 1 }
  0xcf   :  { %419 = vsyncpa [#allocation4 + $0x1], 1 }

</bundles_post_ra>
